<compile_context>
chip_gen: v5e
topology: v5e:2x2
jax: 0.10.0
libtpu: 0.0.40
codegen_flags: <defaults>
</compile_context>

<pallas_src>
import functools

import numpy as np

import jax
import jax.numpy as jnp
from jax import lax
from jax.experimental import pallas as pl
from jax.experimental.pallas import tpu as pltpu


def _spatial_attention_kernel(w_ref, m_ref, x_ref, o_ref, *, W):
    # w_ref: SMEM f32[19]        = 18 conv weights (c, ki, kj row-major) + bias
    # m_ref: VMEM f32[9, HWp]    = per-tap zero-padding masks (flat spatial)
    # x_ref: VMEM (Bb, C, HWp)   = batch block of flattened NCHW input
    # o_ref: VMEM (Bb, 1, HWp)   = sigmoid(conv) output block
    Bb, C, HWp = x_ref.shape

    # ---- Fused channel mean / max: one pass over the block, 8 channels
    # ---- (one sublane row) at a time so live vregs stay bounded for any C.
    chunk = 8
    x0 = x_ref[:, 0:min(chunk, C), :].astype(jnp.float32)     # (Bb, <=8, HWp)
    ssum = jnp.sum(x0, axis=1)                                 # (Bb, HWp)
    smax = jnp.max(x0, axis=1)                                 # (Bb, HWp)
    for c0 in range(chunk, C, chunk):
        xc = x_ref[:, c0:c0 + min(chunk, C - c0), :].astype(jnp.float32)
        ssum = ssum + jnp.sum(xc, axis=1)
        smax = jnp.maximum(smax, jnp.max(xc, axis=1))
    avg = ssum * jnp.float32(1.0 / C)

    # ---- 3x3 conv (padding=1) as 9 shifted MACs on the flattened maps.
    w = [w_ref[i] for i in range(19)]          # scalar loads, hoisted once
    acc = jnp.full((Bb, HWp), w[18], dtype=jnp.float32)        # start from bias

    for di in (-1, 0, 1):
        for dj in (-1, 0, 1):
            t = (di + 1) * 3 + (dj + 1)
            # Fold the two per-channel weights before shifting (roll is
            # linear), so each tap needs a single roll + single mask multiply.
            tap = w[t] * avg + w[9 + t] * smax                 # (Bb, HWp)
            off = di * W + dj
            if off != 0:
                # shifted[p] = tap[p + off]; wrapped / out-of-row reads are
                # zeroed by the precomputed boundary mask (== zero padding).
                tap = jnp.roll(tap, -off, axis=-1)
                tap = tap * m_ref[t]                           # (HWp,) bcast
            acc = acc + tap

    o_ref[:, 0, :] = jax.nn.sigmoid(acc).astype(o_ref.dtype)


def _conv3x3_zero_pad_masks(H, W, HWp):
    """Compile-time per-tap masks over the flat (padded) spatial index."""
    idx = np.arange(HWp)
    row, col = idx // W, idx % W
    masks = np.zeros((9, HWp), dtype=np.float32)
    for di in (-1, 0, 1):
        for dj in (-1, 0, 1):
            t = (di + 1) * 3 + (dj + 1)
            ok = ((row + di >= 0) & (row + di < H) &
                  (col + dj >= 0) & (col + dj < W))
            masks[t] = ok.astype(np.float32)
    return jnp.asarray(masks)


def spatial_attention(x, conv_weight, conv_bias):
    """x: (B, C, H, W); conv_weight: (1, 2, 3, 3); conv_bias: (1,)."""
    B, C, H, W = x.shape
    HW = H * W
    HWp = ((HW + 127) // 128) * 128            # lane-dense spatial axis

    # Batch block size: amortize per-step overhead under a conservative VMEM
    # budget (4 MiB per double-buffered input buffer, ~1 MiB per intermediate),
    # but keep >=2 grid steps when B >= 2 so both v7x TensorCores get work.
    in_bytes_per_b = C * HWp * 4
    work_bytes_per_b = HWp * 4
    bb = min(max(1, (4 << 20) // in_bytes_per_b),
             max(1, (1 << 20) // work_bytes_per_b))
    if B >= 2:
        bb = min(bb, (B + 1) // 2)
    bb = max(1, min(bb, B))
    nb = (B + bb - 1) // bb
    Bp = nb * bb                                # pad batch to full blocks

    xf = x.reshape(B, C, HW)
    if Bp != B or HWp != HW:
        xf = jnp.pad(xf, ((0, Bp - B), (0, 0), (0, HWp - HW)))

    w_flat = jnp.concatenate(
        [conv_weight.reshape(-1), conv_bias.reshape(-1)]).astype(jnp.float32)
    masks = _conv3x3_zero_pad_masks(H, W, HWp)

    kernel = functools.partial(_spatial_attention_kernel, W=W)

    cost = pl.CostEstimate(
        flops=int(Bp * C * HWp * 2 + Bp * HWp * 9 * 5),
        transcendentals=int(Bp * HWp),
        bytes_accessed=int(Bp * C * HWp * xf.dtype.itemsize
                           + 9 * HWp * 4
                           + Bp * HWp * x.dtype.itemsize),
    )

    out = pl.pallas_call(
        kernel,
        out_shape=jax.ShapeDtypeStruct((Bp, 1, HWp), x.dtype),
        grid_spec=pltpu.PrefetchScalarGridSpec(
            num_scalar_prefetch=0,
            grid=(nb,),
            in_specs=[
                pl.BlockSpec(memory_space=pltpu.MemorySpace.SMEM),   # weights
                pl.BlockSpec((9, HWp), lambda i: (0, 0)),            # masks (resident)
                pl.BlockSpec((bb, C, HWp), lambda i: (i, 0, 0)),     # x block
            ],
            out_specs=pl.BlockSpec((bb, 1, HWp), lambda i: (i, 0, 0)),
        ),
        compiler_params=pltpu.CompilerParams(
            dimension_semantics=("parallel",),
            vmem_limit_bytes=32 * 1024 * 1024,
        ),
        cost_estimate=cost,
    )(w_flat, masks, xf)

    return out[:B, :, :HW].reshape(B, 1, H, W)


def _reference(x, conv_weight, conv_bias):
    """Pure-JAX reference matching the PyTorch forward."""
    avg_pool = jnp.mean(x, axis=1, keepdims=True)              # (B,1,H,W)
    max_pool = jnp.max(x, axis=1, keepdims=True)               # (B,1,H,W)
    atten = jnp.concatenate([avg_pool, max_pool], axis=1)      # (B,2,H,W)
    conv = lax.conv_general_dilated(
        atten, conv_weight, window_strides=(1, 1), padding=((1, 1), (1, 1)),
        dimension_numbers=("NCHW", "OIHW", "NCHW"))
    return jax.nn.sigmoid(conv + conv_bias.reshape(1, -1, 1, 1))


if __name__ == "__main__":
    key = jax.random.PRNGKey(0)
    kx, kw, kb = jax.random.split(key, 3)

    B, C, H, W = 2, 4, 16, 16
    x = jax.random.normal(kx, (B, C, H, W), dtype=jnp.float32)

    # Deterministic Conv2d(2, 1, kernel_size=3) init (PyTorch-style uniform).
    fan_in = 2 * 3 * 3
    bound = 1.0 / (fan_in ** 0.5)
    conv_weight = jax.random.uniform(kw, (1, 2, 3, 3), jnp.float32, -bound, bound)
    conv_bias = jax.random.uniform(kb, (1,), jnp.float32, -bound, bound)

    out = jax.block_until_ready(spatial_attention(x, conv_weight, conv_bias))

    ref = _reference(x, conv_weight, conv_bias)
    assert out.shape == (B, 1, H, W)
    assert jnp.allclose(out, ref, atol=1e-5, rtol=1e-5), "mismatch vs reference"

    print("KERNEL_OK")
</pallas_src>

<mosaic_0001>
module attributes {stable_mosaic.version = 11 : i64} {
  func.func @_spatial_attention_kernel(%arg0: i32, %arg1: memref<19xf32, #tpu.memory_space<smem>>, %arg2: memref<9x256xf32, #tpu.memory_space<vmem>>, %arg3: memref<1x4x256xf32, #tpu.memory_space<vmem>>, %arg4: memref<1x1x256xf32, #tpu.memory_space<vmem>>) attributes {dimension_semantics = [#tpu.dimension_semantics<parallel>], iteration_bounds = array<i64: 2>, scalar_prefetch = 0 : i64, scratch_operands = 0 : i64, tpu.core_type = #tpu.core_type<tc>, window_params = [{transform_indices = @transform_0, window_bounds = array<i64: 19>}, {pipeline_mode = #tpu.pipeline_mode<synchronous>, transform_indices = @transform_1, window_bounds = array<i64: 9, 256>}, {transform_indices = @transform_2, window_bounds = array<i64: 1, 4, 256>}, {transform_indices = @transform_3, window_bounds = array<i64: 1, 1, 256>}]} {
    %c0 = arith.constant 0 : index
    %c0_0 = arith.constant 0 : index
    %c0_1 = arith.constant 0 : index
    %0 = vector.load %arg3[%c0, %c0_0, %c0_1] : memref<1x4x256xf32, #tpu.memory_space<vmem>>, vector<1x4x256xf32>
    %cst = arith.constant dense<0.000000e+00> : vector<1x256xf32>
    %1 = vector.multi_reduction <add>, %0, %cst [1] : vector<1x4x256xf32> to vector<1x256xf32>
    %cst_2 = arith.constant dense<0xFF800000> : vector<1x256xf32>
    %2 = vector.multi_reduction <maximumf>, %0, %cst_2 [1] : vector<1x4x256xf32> to vector<1x256xf32>
    %cst_3 = arith.constant 2.500000e-01 : f32
    %3 = vector.broadcast %cst_3 : f32 to vector<1x256xf32>
    %4 = arith.mulf %1, %3 : vector<1x256xf32>
    %c0_4 = arith.constant 0 : index
    %5 = memref.load %arg1[%c0_4] : memref<19xf32, #tpu.memory_space<smem>>
    %c1 = arith.constant 1 : index
    %6 = memref.load %arg1[%c1] : memref<19xf32, #tpu.memory_space<smem>>
    %c2 = arith.constant 2 : index
    %7 = memref.load %arg1[%c2] : memref<19xf32, #tpu.memory_space<smem>>
    %c3 = arith.constant 3 : index
    %8 = memref.load %arg1[%c3] : memref<19xf32, #tpu.memory_space<smem>>
    %c4 = arith.constant 4 : index
    %9 = memref.load %arg1[%c4] : memref<19xf32, #tpu.memory_space<smem>>
    %c5 = arith.constant 5 : index
    %10 = memref.load %arg1[%c5] : memref<19xf32, #tpu.memory_space<smem>>
    %c6 = arith.constant 6 : index
    %11 = memref.load %arg1[%c6] : memref<19xf32, #tpu.memory_space<smem>>
    %c7 = arith.constant 7 : index
    %12 = memref.load %arg1[%c7] : memref<19xf32, #tpu.memory_space<smem>>
    %c8 = arith.constant 8 : index
    %13 = memref.load %arg1[%c8] : memref<19xf32, #tpu.memory_space<smem>>
    %c9 = arith.constant 9 : index
    %14 = memref.load %arg1[%c9] : memref<19xf32, #tpu.memory_space<smem>>
    %c10 = arith.constant 10 : index
    %15 = memref.load %arg1[%c10] : memref<19xf32, #tpu.memory_space<smem>>
    %c11 = arith.constant 11 : index
    %16 = memref.load %arg1[%c11] : memref<19xf32, #tpu.memory_space<smem>>
    %c12 = arith.constant 12 : index
    %17 = memref.load %arg1[%c12] : memref<19xf32, #tpu.memory_space<smem>>
    %c13 = arith.constant 13 : index
    %18 = memref.load %arg1[%c13] : memref<19xf32, #tpu.memory_space<smem>>
    %c14 = arith.constant 14 : index
    %19 = memref.load %arg1[%c14] : memref<19xf32, #tpu.memory_space<smem>>
    %c15 = arith.constant 15 : index
    %20 = memref.load %arg1[%c15] : memref<19xf32, #tpu.memory_space<smem>>
    %c16 = arith.constant 16 : index
    %21 = memref.load %arg1[%c16] : memref<19xf32, #tpu.memory_space<smem>>
    %c17 = arith.constant 17 : index
    %22 = memref.load %arg1[%c17] : memref<19xf32, #tpu.memory_space<smem>>
    %c18 = arith.constant 18 : index
    %23 = memref.load %arg1[%c18] : memref<19xf32, #tpu.memory_space<smem>>
    %24 = vector.broadcast %23 : f32 to vector<1x256xf32>
    %25 = vector.broadcast %5 : f32 to vector<1x256xf32>
    %26 = arith.mulf %25, %4 : vector<1x256xf32>
    %27 = vector.broadcast %14 : f32 to vector<1x256xf32>
    %28 = arith.mulf %27, %2 : vector<1x256xf32>
    %29 = arith.addf %26, %28 : vector<1x256xf32>
    %30 = vector.extract_strided_slice %29 {offsets = [0, 239], sizes = [1, 17], strides = [1, 1]} : vector<1x256xf32> to vector<1x17xf32>
    %31 = vector.extract_strided_slice %29 {offsets = [0, 0], sizes = [1, 239], strides = [1, 1]} : vector<1x256xf32> to vector<1x239xf32>
    %32 = tpu.concatenate %30, %31 in 1 : vector<1x17xf32>, vector<1x239xf32> -> vector<1x256xf32>
    %c0_5 = arith.constant 0 : index
    %c0_6 = arith.constant 0 : index
    %33 = vector.load %arg2[%c0_5, %c0_6] : memref<9x256xf32, #tpu.memory_space<vmem>>, vector<1x256xf32>
    %34 = vector.shape_cast %33 : vector<1x256xf32> to vector<256xf32>
    %35 = vector.shape_cast %34 : vector<256xf32> to vector<1x256xf32>
    %36 = arith.mulf %32, %35 : vector<1x256xf32>
    %37 = arith.addf %24, %36 : vector<1x256xf32>
    %38 = vector.broadcast %6 : f32 to vector<1x256xf32>
    %39 = arith.mulf %38, %4 : vector<1x256xf32>
    %40 = vector.broadcast %15 : f32 to vector<1x256xf32>
    %41 = arith.mulf %40, %2 : vector<1x256xf32>
    %42 = arith.addf %39, %41 : vector<1x256xf32>
    %43 = vector.extract_strided_slice %42 {offsets = [0, 240], sizes = [1, 16], strides = [1, 1]} : vector<1x256xf32> to vector<1x16xf32>
    %44 = vector.extract_strided_slice %42 {offsets = [0, 0], sizes = [1, 240], strides = [1, 1]} : vector<1x256xf32> to vector<1x240xf32>
    %45 = tpu.concatenate %43, %44 in 1 : vector<1x16xf32>, vector<1x240xf32> -> vector<1x256xf32>
    %c1_7 = arith.constant 1 : index
    %c0_8 = arith.constant 0 : index
    %46 = vector.load %arg2[%c1_7, %c0_8] : memref<9x256xf32, #tpu.memory_space<vmem>>, vector<1x256xf32>
    %47 = vector.shape_cast %46 : vector<1x256xf32> to vector<256xf32>
    %48 = vector.shape_cast %47 : vector<256xf32> to vector<1x256xf32>
    %49 = arith.mulf %45, %48 : vector<1x256xf32>
    %50 = arith.addf %37, %49 : vector<1x256xf32>
    %51 = vector.broadcast %7 : f32 to vector<1x256xf32>
    %52 = arith.mulf %51, %4 : vector<1x256xf32>
    %53 = vector.broadcast %16 : f32 to vector<1x256xf32>
    %54 = arith.mulf %53, %2 : vector<1x256xf32>
    %55 = arith.addf %52, %54 : vector<1x256xf32>
    %56 = vector.extract_strided_slice %55 {offsets = [0, 241], sizes = [1, 15], strides = [1, 1]} : vector<1x256xf32> to vector<1x15xf32>
    %57 = vector.extract_strided_slice %55 {offsets = [0, 0], sizes = [1, 241], strides = [1, 1]} : vector<1x256xf32> to vector<1x241xf32>
    %58 = tpu.concatenate %56, %57 in 1 : vector<1x15xf32>, vector<1x241xf32> -> vector<1x256xf32>
    %c2_9 = arith.constant 2 : index
    %c0_10 = arith.constant 0 : index
    %59 = vector.load %arg2[%c2_9, %c0_10] : memref<9x256xf32, #tpu.memory_space<vmem>>, vector<1x256xf32>
    %60 = vector.shape_cast %59 : vector<1x256xf32> to vector<256xf32>
    %61 = vector.shape_cast %60 : vector<256xf32> to vector<1x256xf32>
    %62 = arith.mulf %58, %61 : vector<1x256xf32>
    %63 = arith.addf %50, %62 : vector<1x256xf32>
    %64 = vector.broadcast %8 : f32 to vector<1x256xf32>
    %65 = arith.mulf %64, %4 : vector<1x256xf32>
    %66 = vector.broadcast %17 : f32 to vector<1x256xf32>
    %67 = arith.mulf %66, %2 : vector<1x256xf32>
    %68 = arith.addf %65, %67 : vector<1x256xf32>
    %69 = vector.extract_strided_slice %68 {offsets = [0, 255], sizes = [1, 1], strides = [1, 1]} : vector<1x256xf32> to vector<1x1xf32>
    %70 = vector.extract_strided_slice %68 {offsets = [0, 0], sizes = [1, 255], strides = [1, 1]} : vector<1x256xf32> to vector<1x255xf32>
    %71 = tpu.concatenate %69, %70 in 1 : vector<1x1xf32>, vector<1x255xf32> -> vector<1x256xf32>
    %c3_11 = arith.constant 3 : index
    %c0_12 = arith.constant 0 : index
    %72 = vector.load %arg2[%c3_11, %c0_12] : memref<9x256xf32, #tpu.memory_space<vmem>>, vector<1x256xf32>
    %73 = vector.shape_cast %72 : vector<1x256xf32> to vector<256xf32>
    %74 = vector.shape_cast %73 : vector<256xf32> to vector<1x256xf32>
    %75 = arith.mulf %71, %74 : vector<1x256xf32>
    %76 = arith.addf %63, %75 : vector<1x256xf32>
    %77 = vector.broadcast %9 : f32 to vector<1x256xf32>
    %78 = arith.mulf %77, %4 : vector<1x256xf32>
    %79 = vector.broadcast %18 : f32 to vector<1x256xf32>
    %80 = arith.mulf %79, %2 : vector<1x256xf32>
    %81 = arith.addf %78, %80 : vector<1x256xf32>
    %82 = arith.addf %76, %81 : vector<1x256xf32>
    %83 = vector.broadcast %10 : f32 to vector<1x256xf32>
    %84 = arith.mulf %83, %4 : vector<1x256xf32>
    %85 = vector.broadcast %19 : f32 to vector<1x256xf32>
    %86 = arith.mulf %85, %2 : vector<1x256xf32>
    %87 = arith.addf %84, %86 : vector<1x256xf32>
    %88 = vector.extract_strided_slice %87 {offsets = [0, 1], sizes = [1, 255], strides = [1, 1]} : vector<1x256xf32> to vector<1x255xf32>
    %89 = vector.extract_strided_slice %87 {offsets = [0, 0], sizes = [1, 1], strides = [1, 1]} : vector<1x256xf32> to vector<1x1xf32>
    %90 = tpu.concatenate %88, %89 in 1 : vector<1x255xf32>, vector<1x1xf32> -> vector<1x256xf32>
    %c5_13 = arith.constant 5 : index
    %c0_14 = arith.constant 0 : index
    %91 = vector.load %arg2[%c5_13, %c0_14] : memref<9x256xf32, #tpu.memory_space<vmem>>, vector<1x256xf32>
    %92 = vector.shape_cast %91 : vector<1x256xf32> to vector<256xf32>
    %93 = vector.shape_cast %92 : vector<256xf32> to vector<1x256xf32>
    %94 = arith.mulf %90, %93 : vector<1x256xf32>
    %95 = arith.addf %82, %94 : vector<1x256xf32>
    %96 = vector.broadcast %11 : f32 to vector<1x256xf32>
    %97 = arith.mulf %96, %4 : vector<1x256xf32>
    %98 = vector.broadcast %20 : f32 to vector<1x256xf32>
    %99 = arith.mulf %98, %2 : vector<1x256xf32>
    %100 = arith.addf %97, %99 : vector<1x256xf32>
    %101 = vector.extract_strided_slice %100 {offsets = [0, 15], sizes = [1, 241], strides = [1, 1]} : vector<1x256xf32> to vector<1x241xf32>
    %102 = vector.extract_strided_slice %100 {offsets = [0, 0], sizes = [1, 15], strides = [1, 1]} : vector<1x256xf32> to vector<1x15xf32>
    %103 = tpu.concatenate %101, %102 in 1 : vector<1x241xf32>, vector<1x15xf32> -> vector<1x256xf32>
    %c6_15 = arith.constant 6 : index
    %c0_16 = arith.constant 0 : index
    %104 = vector.load %arg2[%c6_15, %c0_16] : memref<9x256xf32, #tpu.memory_space<vmem>>, vector<1x256xf32>
    %105 = vector.shape_cast %104 : vector<1x256xf32> to vector<256xf32>
    %106 = vector.shape_cast %105 : vector<256xf32> to vector<1x256xf32>
    %107 = arith.mulf %103, %106 : vector<1x256xf32>
    %108 = arith.addf %95, %107 : vector<1x256xf32>
    %109 = vector.broadcast %12 : f32 to vector<1x256xf32>
    %110 = arith.mulf %109, %4 : vector<1x256xf32>
    %111 = vector.broadcast %21 : f32 to vector<1x256xf32>
    %112 = arith.mulf %111, %2 : vector<1x256xf32>
    %113 = arith.addf %110, %112 : vector<1x256xf32>
    %114 = vector.extract_strided_slice %113 {offsets = [0, 16], sizes = [1, 240], strides = [1, 1]} : vector<1x256xf32> to vector<1x240xf32>
    %115 = vector.extract_strided_slice %113 {offsets = [0, 0], sizes = [1, 16], strides = [1, 1]} : vector<1x256xf32> to vector<1x16xf32>
    %116 = tpu.concatenate %114, %115 in 1 : vector<1x240xf32>, vector<1x16xf32> -> vector<1x256xf32>
    %c7_17 = arith.constant 7 : index
    %c0_18 = arith.constant 0 : index
    %117 = vector.load %arg2[%c7_17, %c0_18] : memref<9x256xf32, #tpu.memory_space<vmem>>, vector<1x256xf32>
    %118 = vector.shape_cast %117 : vector<1x256xf32> to vector<256xf32>
    %119 = vector.shape_cast %118 : vector<256xf32> to vector<1x256xf32>
    %120 = arith.mulf %116, %119 : vector<1x256xf32>
    %121 = arith.addf %108, %120 : vector<1x256xf32>
    %122 = vector.broadcast %13 : f32 to vector<1x256xf32>
    %123 = arith.mulf %122, %4 : vector<1x256xf32>
    %124 = vector.broadcast %22 : f32 to vector<1x256xf32>
    %125 = arith.mulf %124, %2 : vector<1x256xf32>
    %126 = arith.addf %123, %125 : vector<1x256xf32>
    %127 = vector.extract_strided_slice %126 {offsets = [0, 17], sizes = [1, 239], strides = [1, 1]} : vector<1x256xf32> to vector<1x239xf32>
    %128 = vector.extract_strided_slice %126 {offsets = [0, 0], sizes = [1, 17], strides = [1, 1]} : vector<1x256xf32> to vector<1x17xf32>
    %129 = tpu.concatenate %127, %128 in 1 : vector<1x239xf32>, vector<1x17xf32> -> vector<1x256xf32>
    %c8_19 = arith.constant 8 : index
    %c0_20 = arith.constant 0 : index
    %130 = vector.load %arg2[%c8_19, %c0_20] : memref<9x256xf32, #tpu.memory_space<vmem>>, vector<1x256xf32>
    %131 = vector.shape_cast %130 : vector<1x256xf32> to vector<256xf32>
    %132 = vector.shape_cast %131 : vector<256xf32> to vector<1x256xf32>
    %133 = arith.mulf %129, %132 : vector<1x256xf32>
    %134 = arith.addf %121, %133 : vector<1x256xf32>
    %135 = arith.negf %134 : vector<1x256xf32>
    %136 = math.exp %135 : vector<1x256xf32>
    %cst_21 = arith.constant 1.000000e+00 : f32
    %137 = vector.broadcast %cst_21 : f32 to vector<1x256xf32>
    %138 = arith.addf %137, %136 : vector<1x256xf32>
    %139 = arith.divf %137, %138 : vector<1x256xf32>
    %c0_22 = arith.constant 0 : index
    %c0_23 = arith.constant 0 : index
    %c0_24 = arith.constant 0 : index
    %140 = vector.load %arg4[%c0_22, %c0_23, %c0_24] : memref<1x1x256xf32, #tpu.memory_space<vmem>>, vector<1x1x256xf32>
    %141 = vector.shape_cast %140 : vector<1x1x256xf32> to vector<1x256xf32>
    %142 = vector.shape_cast %139 : vector<1x256xf32> to vector<1x1x256xf32>
    tpu.vector_store %arg4[%c0_22, %c0_23, %c0_24], %142 {strides = array<i32>} : memref<1x1x256xf32, #tpu.memory_space<vmem>>, vector<1x1x256xf32>,
    return
  }
  func.func @transform_0(%arg0: i32) -> i32 {
    %c0_i32 = arith.constant 0 : i32
    %c0_i32_0 = arith.constant 0 : i32
    return %c0_i32 : i32
  }
  func.func @transform_1(%arg0: i32) -> (i32, i32) {
    %c0_i32 = arith.constant 0 : i32
    %c0_i32_0 = arith.constant 0 : i32
    %c0_i32_1 = arith.constant 0 : i32
    return %c0_i32, %c0_i32_0 : i32, i32
  }
  func.func @transform_2(%arg0: i32) -> (i32, i32, i32) {
    %c0_i32 = arith.constant 0 : i32
    %c0_i32_0 = arith.constant 0 : i32
    %c0_i32_1 = arith.constant 0 : i32
    return %arg0, %c0_i32, %c0_i32_0 : i32, i32, i32
  }
  func.func @transform_3(%arg0: i32) -> (i32, i32, i32) {
    %c0_i32 = arith.constant 0 : i32
    %c0_i32_0 = arith.constant 0 : i32
    %c0_i32_1 = arith.constant 0 : i32
    return %arg0, %c0_i32, %c0_i32_0 : i32, i32, i32
  }
}

</mosaic_0001>

<bundles_post_ra>
// kernel: tpu_custom_call.1
= control target key start
LH: loop header
LB: loop body
LE: loop exit
PB: predicated region body
PF: predicated region fallthrough
CT: control target
= control target key end

     0   :  { %8 = vsyncpa [#allocation5], 0  ;;  %s1253_s0 = inlined_call_operand.hbm [shape: f32[19], index: 0, kind: input, shape index: {}]   ;;  %s1254_s1 = inlined_call_operand.hbm [shape: f32[9,256], index: 1, kind: input, shape index: {}]   ;;  %s1255_s2 = inlined_call_operand.hbm [shape: f32[2,4,256], index: 2, kind: input, shape index: {}]   ;;  %s1256_s3 = inlined_call_operand.hbm [shape: f32[2,1,256], index: 3, kind: output, shape index: {}]  }
   0x1   :  { %9 = vsyncpa [#allocation3], 0 }
   0x2   :  { %10 = vsyncpa [#allocation8], 0 }
   0x3   :  { %12 = vsyncpa [#allocation8 + $0x1], 0 }
   0x4   :  { %13 = vsyncpa [#allocation4], 0 }
   0x5   :  { %15 = vsyncpa [#allocation4 + $0x1], 0  ;;  %s1005_s12 = smov 0   ;;  %s1007_s13 = smov 0  }
   0x6   :  { %s1009_s14 = smov 0   ;;  %s1011_s15 = smov 0  }
   0x7 LB: > { %s1026_s16 = sadd.s32 4294967295, %s971_s15   ;;  %s699_s17 = sadd.s32 4294967294, %s971_s15   ;;  %s971_s15 = sphi %s1011_s15, %s1268_s15   ;;  %s967_s14 = sphi %s1009_s14, %s1267_s14   ;;  %s963_s13 = sphi %s1007_s13, %s1266_s13   ;;  %s959_s12 = sphi %s1005_s12, %s1265_s12  }
   0x8   : > { %p83_p0 = scmp.ne.s32.totalorder %s963_s13, %s959_s12  ;;  %p84_p1 = scmp.eq.s32.totalorder %s1026_s16, 0 }
   0x9   : > { %p107_p2 = scmp.eq.s32.totalorder %s1026_s16, 1  ;;  %p113_p3 = scmp.eq.s32.totalorder %s699_s17, 1 }
   0xa   : > { %p1035_p4 = por %p84_p1, %p83_p0  ;;  %p700_p5 = scmp.ge.s32.totalorder %s971_s15, 1 }
   0xb   : > { %p1040_p6 = por %p113_p3, %p83_p0  ;;  %p120_p7 = scmp.lt.s32.totalorder %s971_s15, 3 }
   0xc   : > { %s132_s22 = sshll.u32 %s1253_s0, 4  ;;  %s141_s26 = sshll.u32 %s1254_s1, 4  ;;  %s133_s22 = int_to_ptr.hbm [resolvable:$true] %s132_s22  ;;  %s142_s26 = int_to_ptr.hbm [resolvable:$true] %s141_s26 }
   0xd   : > { %p1048_p8 = pnand %p700_p5, %p120_p7  ;;  %s973_s27 = smov [#allocation6]  }
   0xe   : > { %s143_s28 = sshll.u32 %s973_s27, 4  ;;  %s974_s29 = smov [#allocation2]   ;;  %s144_s28 = int_to_ptr.vmem [resolvable:$true] %s143_s28 }
   0xf   : > { %p749_p10 = pneg %p1048_p8  ;;  %s975_s30 = smov 256  }
  0x10   : > { %s976_s4 = smov 16   ;;  %s1061_s5 = sadd.s32 1, %s971_s15  }
  0x11   : > { %p750_p11 = pnand %p749_p10, %p84_p1  ;;  %s67_s6 = ssub.s32 %s971_s15, %s1061_s5 }
  0x12   : > { %p68_p12 = scmp.eq.s32.totalorder %s67_s6, 0  ;;  %s70_s7 = sadd.s32 1, %s967_s14 }
  0x13   : > { %752 = dma.hbm_to_smem (!%p750_p11), %s133_s22, 16, %s974_s29, [#allocation5]  }
  0x14   : > { %755 = dma.hbm_to_vmem [thread:$0]  (!%p750_p11), %s142_s26, 512, %s144_s28, [#allocation3], %s975_s30, %s975_s30, %s976_s4  }
  0x15   : > { %p77_p13 = scmp.ne.s32.totalorder %s967_s14, %s963_s13  ;;  %p78_p0 = scmp.eq.s32.totalorder %s971_s15, 0 }
  0x16   : > { %s1070_s8 = scalar_select %p68_p12, %s967_s14, %s70_s7  }
  0x17   : > { %p79_p3 = por %p78_p0, %p77_p13  ;;  %p1074_p5 = por %p107_p2, %p77_p13 }
  0x18   : > { %p766_p7 = scmp.lt.s32.totalorder %s971_s15, 2  ;;  %s157_s10 = sand.u32 1, %s967_s14  }
  0x19   : > { %s704_s11 = sshll.u32 %s157_s10, 3  ;;  %s736_s17 = sshll.u32 %s971_s15, 3 }
  0x1a   : > { %s166_s22 = scalar_lea.hbm %s1255_s2, %s736_s17  ;;  %s161_s24 = scalar_lea.vmem [#allocation7], %s704_s11 }
  0x1b   : > { %s170_s25 = sshll.u32 %s161_s24, 4  ;;  %s168_s26 = sshll.u32 %s166_s22, 4  ;;  %s171_s25 = int_to_ptr.vmem [resolvable:$true] %s170_s25  ;;  %s169_s26 = int_to_ptr.hbm [resolvable:$true] %s168_s26 }
  0x1c   : > { %p1084_p10 = pnand %p766_p7, %p79_p3  ;;  %s158_s28 = scalar_lea.sflag [#allocation8], %s157_s10 }
  0x1d   : > { %s867_s29 = sshra.s32 %s169_s26, 4  ;;  %s874_s7 = scalar_lea.hbm %s1255_s2, 16  ;;  %s868_s29 = int_to_ptr.hbm [resolvable:$true] %s867_s29 }
  0x1e   : > { %s869_s30 = scalar_lea.hbm %s868_s29, 8  ;;  %p871_p11 = pneg %p1084_p10 }
  0x1f   : > { %p870_p2 = scmp.ne.s32.totalorder %s868_s29, %s869_s30  ;;  %p875_p0 = scmp.lt.s32.totalorder %s868_s29, %s1255_s2 }
  0x20   : > { %p876_p3 = scmp.lt.s32.totalorder %s874_s7, %s869_s30 }
  0x21   : > { %p872_p12 = pnand %p871_p11, %p870_p2 }
  0x22   : > { %p877_p7 = por %p876_p3, %p875_p0 }
  0x23   : > { %p873_p13 = pneg %p872_p12 }
  0x25   : > { %p878_p9 = pnand %p877_p7, %p873_p13 }
  0x27   : > { %881 = shalt.err (!%p878_p9)
}
  0x28   : > { %759 = dma.hbm_to_vmem [thread:$0]  (!%p1084_p10), %s169_s26, 128, %s171_s25, %s158_s28  }
  0x29   : > { %179 = sbr.rel (%p1048_p8) target bundleno = 284 (0x11c), region = 32 }
  0x2e   : > { %942 = dma.done.wait (%p84_p1), [#allocation5], 16  }
  0x2f   : > { %944 = vsyncadd (%p84_p1), [#allocation5], 4294967280 }
  0x30   : > { %946 = dma.done.wait (%p84_p1), [#allocation3], 512  }
  0x31   : > { %948 = vsyncadd (%p84_p1), [#allocation3], 4294966784  ;;  %s1109_s10 = sand.u32 1, %s963_s13  }
  0x32   : > { %s710_s23 = sshll.u32 %s1109_s10, 3  ;;  %s192_s20 = scalar_lea.sflag [#allocation8], %s1109_s10 }
  0x33   : > { %s195_s21 = scalar_lea.vmem [#allocation7], %s710_s23 }
  0x34   : > { %950 = dma.done.wait (%p1035_p4), %s192_s20, 128  }
  0x35   : > { %952 = vsyncadd (%p1035_p4), %s192_s20, 4294967168 }
  0x36   : > { %201 = sfence }
  0x37   : > { %v220_v0 = vld [vmem:[%s195_s21] sm:$0xff]  ;;  %vm227_vm0 = vcmask 1043456   ;;  %s1119_s22 = sld [smem:[#allocation2 + $0x1]]  ;;  %s977_s4 = smov 16   ;;  %vm298_vm1 = vcmask 138240   ;;  %vm328_vm2 = vcmask 130048  }
  0x38   : > { %222 = vst [vmem:[#allocation1] ss:$2 sm:$0xff] %v220_v0  ;;  %s1121_s18 = sld [smem:[#allocation2 + $0xa]]  ;;  %s978_s6 = smov 17   ;;  %vm359_vm3 = vcmask 121856   ;;  %vm390_vm4 = vcmask 7168  }
  0x39   : > { %s1125_s24 = sld [smem:[#allocation2]]  ;;  %s979_s11 = smov 15   ;;  %vm430_vm5 = vcmask 1039360   ;;  %vm461_vm6 = vcmask 924672   ;;  %vm492_vm7 = vcmask 916480   ;;  %vm523_vm8 = vcmask 908288  }
  0x3a   : > { %s1127_s25 = sld [smem:[#allocation2 + $0x2]] }
  0x3b   : > { %s1129_s26 = sld [smem:[#allocation2 + $0x9]] }
  0x3c   : > { %s1131_s27 = sld [smem:[#allocation2 + $0xb]] }
  0x3d   : > { %v313_v29 = vstv %s1119_s22  ;;  %s1152_s28 = sld [smem:[#allocation2 + $0x3]] }
  0x3e   : > { %v316_v35 = vstv %s1121_s18  ;;  %s1154_s29 = sld [smem:[#allocation2 + $0xc]]  ;;  %s980_s18 = smov 1  }
  0x3f   : > { %v223_v1 = vld.sshfl [vmem:[#allocation1] sm:$0xff pattern:$0x75316420]  ;;  %v224_v2 = vld.sshfl [vmem:[#allocation1 + $0x8] sm:$0xff pattern:$0x75316420]  ;;  %v283_v31 = vstv %s1125_s24 }
  0x40   : > { %v235_v3 = vsel %vm227_vm0, %v224_v2, 0.0  ;;  %242 = vst [vmem:[#allocation1] ss:$2 sm:$0xff] %v220_v0  ;;  %v228_v4 = vsel %vm227_vm0, %v223_v1, 0.0  ;;  %v344_v34 = vstv %s1127_s25  ;;  %s1158_s30 = sld [smem:[#allocation2 + $0x5]]  ;;  %s981_s25 = smov 127  }
  0x41   : > { %v236_v5 = vrot.slane %v235_v3, 4  ;;  %v229_v6 = vrot.slane %v228_v4, 4  ;;  %v286_v36 = vstv %s1129_s26  ;;  %s1163_s7 = sld [smem:[#allocation2 + $0xe]]  ;;  %s982_s26 = smov 113  }
  0x42   : > { %v347_v40 = vstv %s1131_s27  ;;  %s1168_s17 = sld [smem:[#allocation2 + $0x6]]  ;;  %s983_s27 = smov 112  }
  0x43   : > { %v237_v7 = vadd.f32 %v236_v5, %v235_v3  ;;  %v230_v8 = vadd.f32 %v229_v6, %v228_v4  ;;  %v375_v58 = vstv %s1152_s28  ;;  %s1171_s23 = sld [smem:[#allocation2 + $0xf]]  ;;  %s984_s28 = smov 111  }
  0x44   : > { %v378_v59 = vstv %s1154_s29  ;;  %s1181_s20 = sld [smem:[#allocation2 + $0x7]] }
  0x45   : > { %v238_v9 = vrot.slane %v237_v7, 2  ;;  %v231_v10 = vrot.slane %v230_v8, 2  ;;  %s727_s21 = sld [smem:[#allocation2 + $0x10]] }
  0x46   : > { %v416_v62 = vstv %s1158_s30  ;;  %s1186_s22 = sld [smem:[#allocation2 + $0x8]] }
  0x47   : > { %v239_v11 = vadd.f32 %v238_v9, %v237_v7  ;;  %v244_v12 = vld.sshfl [vmem:[#allocation1 + $0x8] sm:$0xff pattern:$0x75316420]  ;;  %v243_v13 = vld.sshfl [vmem:[#allocation1] sm:$0xff pattern:$0x75316420]  ;;  %v232_v15 = vadd.f32 %v231_v10, %v230_v8  ;;  %v419_v2 = vstv %s1163_s7 }
  0x48   : > { %v254_v14 = vsel %vm227_vm0, %v244_v12, -inf  ;;  %v247_v16 = vsel %vm227_vm0, %v243_v13, -inf  ;;  %v447_v7 = vstv %s1168_s17  ;;  %s728_s24 = sld [smem:[#allocation2 + $0x11]]  ;;  %s733_s7 = sshll.u32 %s1026_s16, 1  ;;  %vm581_vm0 = vcmask 1040384  }
  0x49   : > { %v240_v17 = vrot.slane %v239_v11, 1  ;;  %v255_v18 = vrot.slane %v254_v14, 4  ;;  %v248_v19 = vrot.slane %v247_v16, 4  ;;  %v233_v23 = vrot.slane %v232_v15, 1  ;;  %s729_s29 = sld [smem:[#allocation2 + $0x12]] }
  0x4a   : > { %v450_v8 = vstv %s1171_s23  ;;  %s1203_s30 = sld [smem:[#allocation2 + $0x4]]  ;;  %s600_s23 = scalar_lea.hbm %s1256_s3, %s733_s7 }
  0x4b   : > { %v241_v20 = vadd.f32 %v240_v17, %v239_v11  ;;  %v256_v21 = vmax.f32 %v254_v14, %v255_v18  ;;  %v249_v22 = vmax.f32 %v247_v16, %v248_v19  ;;  %v234_v30 = vadd.f32 %v233_v23, %v232_v15 }
  0x4c   : > { %v478_v18 = vstv %s1181_s20  ;;  %v481_v19 = vstv %s727_s21  ;;  %s604_s21 = sshll.u32 %s600_s23, 4  ;;  %s605_s21 = int_to_ptr.hbm [resolvable:$true] %s604_s21 }
  0x4d   : > { %v257_v24 = vrot.slane %v256_v21, 2  ;;  %v250_v25 = vrot.slane %v249_v22, 2  ;;  %v1133_v27 = vmul.f32 0.25, %v241_v20  ;;  %v1145_v41 = vmul.f32 0.25, %v234_v30 }
  0x4f   : > { %v258_v26 = vmax.f32 %v256_v21, %v257_v24  ;;  %v251_v28 = vmax.f32 %v249_v22, %v250_v25  ;;  %v315_v38 = vmul.f32 %v313_v29, %v1133_v27  ;;  %v285_v39 = vmul.f32 %v283_v31, %v1133_v27 }
  0x50   : > { %v346_v42 = vmul.f32 %v344_v34, %v1133_v27  ;;  %v314_v49 = vmul.f32 %v313_v29, %v1145_v41  ;;  %v284_v52 = vmul.f32 %v283_v31, %v1145_v41  ;;  %v345_v54 = vmul.f32 %v344_v34, %v1145_v41 }
  0x51   : > { %v259_v32 = vrot.slane %v258_v26, 1  ;;  %v252_v33 = vrot.slane %v251_v28, 1  ;;  %v376_v61 = vmul.f32 %v375_v58, %v1145_v41  ;;  %v377_v0 = vmul.f32 %v375_v58, %v1133_v27 }
  0x52   : > { %v417_v3 = vmul.f32 %v416_v62, %v1145_v41  ;;  %v448_v10 = vmul.f32 %v447_v7, %v1145_v41  ;;  %v418_v12 = vmul.f32 %v416_v62, %v1133_v27  ;;  %v449_v14 = vmul.f32 %v447_v7, %v1133_v27 }
  0x53   : > { %v1140_v37 = vmax.f32 %v258_v26, %v259_v32  ;;  %v1149_v44 = vmax.f32 %v251_v28, %v252_v33  ;;  %v480_v21 = vmul.f32 %v478_v18, %v1133_v27  ;;  %v479_v23 = vmul.f32 %v478_v18, %v1145_v41 }
  0x54   : > { %v509_v25 = vstv %s1186_s22  ;;  %v512_v26 = vstv %s728_s24  ;;  %s590_s22 = scalar_lea.sflag [#allocation4], %s1109_s10 }
  0x55   : > { %v318_v43 = vmul.f32 %v316_v35, %v1140_v37  ;;  %v288_v45 = vmul.f32 %v286_v36, %v1140_v37  ;;  %v349_v46 = vmul.f32 %v347_v40, %v1140_v37  ;;  %v317_v51 = vmul.f32 %v316_v35, %v1149_v44 }
  0x56   : > { %v287_v53 = vmul.f32 %v286_v36, %v1149_v44  ;;  %v348_v55 = vmul.f32 %v347_v40, %v1149_v44  ;;  %v379_v63 = vmul.f32 %v378_v59, %v1149_v44  ;;  %v380_v1 = vmul.f32 %v378_v59, %v1140_v37  ;;  %v396_v59 = vld [vmem:[#allocation6 + $0x3] ss:$8 sm:$0x3] }
  0x57   : > { %v320_v47 = vadd.f32 %v318_v43, %v315_v38  ;;  %v290_v48 = vadd.f32 %v288_v45, %v285_v39  ;;  %v351_v50 = vadd.f32 %v349_v46, %v346_v42  ;;  %v319_v56 = vadd.f32 %v317_v51, %v314_v49  ;;  %v303_v43 = vld [vmem:[#allocation6] ss:$8 sm:$0x3]  ;;  %v365_v51 = vld [vmem:[#allocation6 + $0x2] ss:$8 sm:$0x3] }
  0x58   : > { %v289_v57 = vadd.f32 %v287_v53, %v284_v52  ;;  %v350_v60 = vadd.f32 %v348_v55, %v345_v54  ;;  %v420_v4 = vmul.f32 %v419_v2, %v1149_v44  ;;  %v381_v5 = vadd.f32 %v379_v63, %v376_v61 }
  0x59   : > { %322 = vrot.lane.b32.xlu1 %v320_v47, %s977_s4  ;;  %292 = vrot.lane.b32.xlu0 %v290_v48, %s978_s6  ;;  %v382_v6 = vadd.f32 %v380_v1, %v377_v0  ;;  %v451_v11 = vmul.f32 %v450_v8, %v1149_v44  ;;  %v421_v13 = vmul.f32 %v419_v2, %v1140_v37  ;;  %v305_v46 = vperm.slane %v303_v43, 0 }
  0x5a   : > { %353 = vrot.lane.b32.xlu2 %v351_v50, %s979_s11  ;;  %v422_v9 = vadd.f32 %v420_v4, %v417_v3  ;;  %v452_v15 = vmul.f32 %v450_v8, %v1140_v37  ;;  %v483_v22 = vmul.f32 %v481_v19, %v1140_v37  ;;  %v482_v24 = vmul.f32 %v481_v19, %v1149_v44  ;;  %v334_v50 = vld [vmem:[#allocation6 + $0x1] ss:$8 sm:$0x3] }
  0x5b   : > { %v453_v16 = vadd.f32 %v451_v11, %v448_v10  ;;  %v423_v17 = vadd.f32 %v421_v13, %v418_v12  ;;  %v510_v28 = vmul.f32 %v509_v25, %v1145_v41  ;;  %v513_v29 = vmul.f32 %v512_v26, %v1149_v44 }
  0x5c   : > { %v454_v20 = vadd.f32 %v452_v15, %v449_v14  ;;  %v485_v30 = vadd.f32 %v483_v22, %v480_v21  ;;  %v484_v31 = vadd.f32 %v482_v24, %v479_v23  ;;  %v511_v33 = vmul.f32 %v509_v25, %v1133_v27  ;;  %v437_v22 = vld [vmem:[#allocation6 + $0x5] ss:$8 sm:$0x3] }
  0x5d   : > { %v515_v32 = vadd.f32 %v513_v29, %v510_v28  ;;  %v514_v34 = vmul.f32 %v512_v26, %v1140_v37  ;;  %v306_v47 = vperm.slane %v303_v43, 1  ;;  %v337_v58 = vperm.slane %v334_v50, 1 }
  0x5e   : > { %v368_v63 = vperm.slane %v365_v51, 1  ;;  %v398_v3 = vperm.slane %v396_v59, 0  ;;  %v399_v4 = vperm.slane %v396_v59, 1  ;;  %v439_v29 = vperm.slane %v437_v22, 0 }
  0x5f   : > { %v516_v35 = vadd.f32 %v514_v34, %v511_v33 }
  0x61   : > { %326 = vrot.lane.b32.xlu1 %v319_v56, %s977_s4  ;;  %296 = vrot.lane.b32.xlu0 %v289_v57, %s978_s6  ;;  %s1205_s4 = sld [smem:[#allocation2 + $0xd]]  ;;  %v282_v56 = vstv %s729_s29  ;;  %v336_v57 = vperm.slane %v334_v50, 0  ;;  %s711_s6 = sshll.u32 %s1109_s10, 1 }
  0x62   : > { %357 = vrot.lane.b32.xlu2 %v350_v60, %s979_s11  ;;  %v367_v60 = vperm.slane %v365_v51, 0  ;;  %s219_s16 = scalar_lea.vmem [#allocation9], %s711_s6 }
  0x63   : > { %s602_s20 = sshll.u32 %s219_s16, 4  ;;  %s603_s20 = int_to_ptr.vmem [resolvable:$true] %s602_s20 }
  0x69   : > { %388 = vrot.lane.b32.xlu1 %v381_v5, %s980_s18  ;;  %384 = vrot.lane.b32.xlu0 %v382_v6, %s980_s18  ;;  %v406_v5 = vstv %s1203_s30  ;;  %v409_v6 = vstv %s1205_s4  ;;  %s911_s18 = sshra.s32 %s605_s21, 4  ;;  %s912_s18 = int_to_ptr.hbm [resolvable:$true] %s911_s18 }
  0x6a   : > { %426 = vrot.lane.b32.xlu2 %v422_v9, %s981_s25  ;;  %v410_v21 = vmul.f32 %v409_v6, %v1149_v44  ;;  %v411_v25 = vmul.f32 %v409_v6, %v1140_v37  ;;  %s913_s24 = scalar_lea.hbm %s912_s18, 2  ;;  %p918_p9 = scmp.lt.s32.totalorder %s912_s18, %s1256_s3 }
  0x6b   : > { %p914_p1 = scmp.ne.s32.totalorder %s912_s18, %s913_s24 }
  0x6d   : > { %p915_p4 = pnand %p914_p1, %p1074_p5 }
  0x6f   : > { %p916_p8 = pneg %p915_p4 }
  0x71   : > { %457 = vrot.lane.b32.xlu1 %v453_v16, %s982_s26  ;;  %428 = vrot.lane.b32.xlu0 %v423_v17, %s981_s25  ;;  %v407_v16 = vmul.f32 %v406_v5, %v1145_v41 }
  0x72   : > { %459 = vrot.lane.b32.xlu2 %v454_v20, %s982_s26  ;;  %v408_v20 = vmul.f32 %v406_v5, %v1133_v27 }
  0x79   : > { %490 = vrot.lane.b32.xlu1 %v485_v30, %s983_s27  ;;  %488 = vrot.lane.b32.xlu0 %v484_v31, %s983_s27  ;;  %v440_v30 = vperm.slane %v437_v22, 1  ;;  %v468_v31 = vld [vmem:[#allocation6 + $0x6] ss:$8 sm:$0x3]  ;;  %s917_s27 = scalar_lea.hbm %s1256_s3, 4 }
  0x7a   : > { %519 = vrot.lane.b32.xlu2 %v515_v32, %s984_s28  ;;  %v412_v32 = vadd.f32 %v410_v21, %v407_v16  ;;  %v470_v44 = vperm.slane %v468_v31, 0  ;;  %p919_p10 = scmp.lt.s32.totalorder %s917_s27, %s913_s24 }
  0x7c   : > { %p920_p2 = por %p919_p10, %p918_p9 }
  0x7e   : > { %p921_p11 = pnand %p920_p2, %p916_p8 }
  0x81   : > { %521 = vrot.lane.b32.xlu0 %v516_v35, %s984_s28 }
  0xb4   : > { %v354_v39 = vpop.permute.xlu2 %353 }
  0xbc   : > { %v358_v45 = vpop.permute.xlu2 %357 }
  0xbd   : > { %v360_v7 = vsel %vm359_vm3, %v358_v45, %v354_v39  ;;  %v363_v8 = vsel %vm359_vm3, %v354_v39, %v358_v45 }
  0xbe   : > { %v371_v18 = vmul.f32 %v367_v60, %v363_v8  ;;  %v372_v19 = vmul.f32 %v368_v63, %v360_v7 }
  0xc4   : > { %v427_v2 = vpop.permute.xlu2 %426 }
  0xcb   : > { %v323_v36 = vpop.permute.xlu1 %322  ;;  %v293_v38 = vpop.permute.xlu0 %292 }
  0xcc   : > { %v460_v27 = vpop.permute.xlu2 %459 }
  0xd3   : > { %v327_v40 = vpop.permute.xlu1 %326  ;;  %v297_v42 = vpop.permute.xlu0 %296 }
  0xd4   : > { %v299_v48 = vsel %vm298_vm1, %v297_v42, %v293_v38  ;;  %v302_v49 = vsel %vm298_vm1, %v293_v38, %v297_v42  ;;  %v329_v61 = vsel %vm328_vm2, %v327_v40, %v323_v36  ;;  %v332_v62 = vsel %vm328_vm2, %v323_v36, %v327_v40  ;;  %v499_v38 = vld [vmem:[#allocation6 + $0x7] ss:$8 sm:$0x3]  ;;  %v520_v60 = vpop.permute.xlu2 %519 }
  0xd5   : > { %v309_v52 = vmul.f32 %v305_v46, %v302_v49  ;;  %v310_v53 = vmul.f32 %v306_v47, %v299_v48  ;;  %v340_v9 = vmul.f32 %v336_v57, %v332_v62  ;;  %v341_v10 = vmul.f32 %v337_v58, %v329_v61 }
  0xd6   : > { %v413_v36 = vadd.f32 %v411_v25, %v408_v20  ;;  %v471_v42 = vperm.slane %v468_v31, 1  ;;  %v501_v49 = vperm.slane %v499_v38, 0  ;;  %v502_v50 = vperm.slane %v499_v38, 1 }
  0xd7   : > { %v311_v0 = vadd.f32 %v309_v52, %v282_v56  ;;  %v312_v1 = vadd.f32 %v310_v53, %v282_v56  ;;  %v530_v53 = vld [vmem:[#allocation6 + $0x10] ss:$8 sm:$0x3] }
  0xd8   : > { %v532_v61 = vperm.slane %v530_v53, 0  ;;  %v533_v62 = vperm.slane %v530_v53, 1 }
  0xd9   : > { %v342_v13 = vadd.f32 %v340_v9, %v311_v0  ;;  %v343_v14 = vadd.f32 %v341_v10, %v312_v1 }
  0xdb   : > { %v389_v54 = vpop.permute.xlu1 %388  ;;  %v385_v55 = vpop.permute.xlu0 %384  ;;  %v373_v26 = vadd.f32 %v371_v18, %v342_v13  ;;  %v374_v28 = vadd.f32 %v372_v19, %v343_v14 }
  0xdc   : > { %v391_v11 = vsel %vm390_vm4, %v389_v54, %v385_v55  ;;  %v394_v12 = vsel %vm390_vm4, %v385_v55, %v389_v54 }
  0xdd   : > { %v402_v23 = vmul.f32 %v398_v3, %v394_v12  ;;  %v403_v24 = vmul.f32 %v399_v4, %v391_v11 }
  0xdf   : > { %v404_v34 = vadd.f32 %v402_v23, %v373_v26  ;;  %v405_v35 = vadd.f32 %v403_v24, %v374_v28 }
  0xe1   : > { %v414_v47 = vadd.f32 %v412_v32, %v404_v34  ;;  %v415_v48 = vadd.f32 %v413_v36, %v405_v35  ;;  %v584_v32 = vlaneseq }
  0xe3   : > { %v458_v15 = vpop.permute.xlu1 %457  ;;  %v429_v17 = vpop.permute.xlu0 %428  ;;  %vm586_vm2 = vcmp.lt.s32.totalorder %v584_v32, 256 }
  0xe4   : > { %v431_v41 = vsel %vm430_vm5, %v427_v2, %v429_v17  ;;  %v435_v33 = vsel %vm430_vm5, %v429_v17, %v427_v2  ;;  %v462_v45 = vsel %vm461_vm6, %v458_v15, %v460_v27  ;;  %v466_v46 = vsel %vm461_vm6, %v460_v27, %v458_v15 }
  0xe5   : > { %v443_v39 = vmul.f32 %v439_v29, %v431_v41  ;;  %v444_v40 = vmul.f32 %v440_v30, %v435_v33  ;;  %v474_v56 = vmul.f32 %v470_v44, %v462_v45  ;;  %v475_v57 = vmul.f32 %v471_v42, %v466_v46 }
  0xe7   : > { %v445_v54 = vadd.f32 %v443_v39, %v414_v47  ;;  %v446_v55 = vadd.f32 %v444_v40, %v415_v48 }
  0xe9   : > { %v476_v63 = vadd.f32 %v474_v56, %v445_v54  ;;  %v477_v0 = vadd.f32 %v475_v57, %v446_v55 }
  0xeb   : > { %v491_v37 = vpop.permute.xlu1 %490  ;;  %v489_v43 = vpop.permute.xlu0 %488 }
  0xec   : > { %v493_v51 = vsel %vm492_vm7, %v489_v43, %v491_v37  ;;  %v497_v52 = vsel %vm492_vm7, %v491_v37, %v489_v43 }
  0xed   : > { %v505_v58 = vmul.f32 %v501_v49, %v493_v51  ;;  %v506_v59 = vmul.f32 %v502_v50, %v497_v52 }
  0xef   : > { %v507_v4 = vadd.f32 %v505_v58, %v476_v63  ;;  %v508_v5 = vadd.f32 %v506_v59, %v477_v0 }
  0xf3   : > { %v522_v1 = vpop.permute.xlu0 %521 }
  0xf4   : > { %v524_v2 = vsel %vm523_vm8, %v520_v60, %v522_v1  ;;  %v528_v3 = vsel %vm523_vm8, %v522_v1, %v520_v60 }
  0xf5   : > { %v536_v6 = vmul.f32 %v532_v61, %v524_v2  ;;  %v537_v7 = vmul.f32 %v533_v62, %v528_v3 }
  0xf7   : > { %v538_v8 = vadd.f32 %v536_v6, %v507_v4  ;;  %v539_v9 = vadd.f32 %v537_v7, %v508_v5 }
  0xf9   : > { %v730_v10 = vmul.f32 -1.442695, %v538_v8  ;;  %v731_v11 = vmul.f32 -1.442695, %v539_v9 }
  0xfb   : > { %814 = vpow2.f32 %v730_v10 }
  0xfc   : > { %816 = vpow2.f32 %v731_v11 }
 0x101   : > { %v815_v12 = vpop.eup %814 }
 0x102   : > { %v817_v13 = vpop.eup %816  ;;  %v546_v14 = vadd.f32 1.0, %v815_v12 }
 0x103   : > { %v547_v15 = vadd.f32 1.0, %v817_v13 }
 0x104   : > { %818 = vrcp.f32 %v546_v14  ;;  %vm553_vm11 = vweird.f32 %v546_v14  ;;  %v559_v28 = vand.u32 2147483648, %v546_v14  ;;  %v557_v30 = vand.u32 2147483647, %v546_v14 }
 0x105   : > { %820 = vrcp.f32 %v547_v15  ;;  %v574_v23 = vand.u32 2147483648, %v547_v15  ;;  %v572_v25 = vand.u32 2147483647, %v547_v15  ;;  %vm568_vm13 = vweird.f32 %v547_v15 }
 0x106   : > { %v560_v35 = vor.u32 1.1754944e-38, %v559_v28  ;;  %vm558_vm1 = vcmp.eq.f32.partialorder %v557_v30, 8.507059e+37 }
 0x107   : > { %v575_v41 = vor.u32 1.1754944e-38, %v574_v23  ;;  %vm573_vm15 = vcmp.eq.f32.partialorder %v572_v25, 8.507059e+37 }
 0x10a   : > { %v819_v16 = vpop.eup %818 }
 0x10b   : > { %v821_v17 = vpop.eup %820  ;;  %v549_v18 = vmul.f32 %v819_v16, %v546_v14  ;;  %vm554_vm9 = vweird.f32 %v819_v16 }
 0x10c   : > { %v564_v19 = vmul.f32 %v821_v17, %v547_v15  ;;  %vm569_vm10 = vweird.f32 %v821_v17  ;;  %vm1218_vm12 = vmor %vm553_vm11, %vm554_vm9 }
 0x10d   : > { %v550_v20 = vsub.f32 1.0, %v549_v18  ;;  %vm570_vm14 = vmor %vm568_vm13, %vm569_vm10 }
 0x10e   : > { %v565_v21 = vsub.f32 1.0, %v564_v19 }
 0x10f   : > { %v551_v22 = vmul.f32 %v819_v16, %v550_v20 }
 0x110   : > { %v566_v24 = vmul.f32 %v821_v17, %v565_v21 }
 0x111   : > { %v552_v26 = vadd.f32 %v819_v16, %v551_v22 }
 0x112   : > { %v567_v31 = vadd.f32 %v821_v17, %v566_v24 }
 0x113   : > { %v556_v33 = vsel %vm1218_vm12, %v819_v16, %v552_v26 }
 0x114   : > { %v571_v34 = vsel %vm570_vm14, %v821_v17, %v567_v31  ;;  %v561_v44 = vsel %vm558_vm1, %v560_v35, %v556_v33 }
 0x115   : > { %v576_v36 = vsel %vm573_vm15, %v575_v41, %v571_v34 }
 0x116   : > { %v580_v27 = vrot.slane %v576_v36, 7 }
 0x118   : > { %v582_v38 = vsel %vm581_vm0, %v561_v44, %v580_v27 }
 0x119   : > { %588 = vst.msk [vmem:[%s219_s16] sm:$0x3] %vm586_vm2, %v582_v38 }
 0x11a   : > { %924 = shalt.err (!%p921_p11)
}
 0x11b   : > { %747 = dma.vmem_to_hbm [thread:$0]  (%p1074_p5), %s603_s20, 32, %s605_s21, %s590_s22  }
 0x11c PF: > { %s616_s10 = sand.u32 1, %s959_s12   ;;  %p1264_p12 = scmp.ge.s32.totalorder %s971_s15, 2 }
 0x11d   : > { %s617_s30 = scalar_lea.sflag [#allocation4], %s616_s10 }
 0x11e   : > { %p761_p13 = pnand %p1264_p12, %p1040_p6 }
 0x120   : > { %p762_p0 = pneg %p761_p13 }
 0x122   : > { %954 = dma.done.wait (%p762_p0), %s617_s30, 32  }
 0x123   : > { %956 = vsyncadd (%p762_p0), %s617_s30, 4294967264  ;;  %p18_p3 = scmp.ge.s32.totalorder %s1061_s5, 4   ;;  %s1265_s12 = smov %s963_s13 }
 0x124   : > { %s1266_s13 = smov %s967_s14  ;;  %s1267_s14 = smov %s1070_s8 }
 0x125   : > { %s1268_s15 = smov %s1061_s5  ;;  %20 = sbr.rel (!%p18_p3) target bundleno = 7 (0x7), region = 94 }
 0x12a   :  { %623 = vsyncpa [#allocation3], 1 }
 0x12b   :  { %625 = vsyncpa [#allocation3 + $0x1], 1 }
 0x12c   :  { %626 = vsyncpa [#allocation8], 1 }
 0x12d   :  { %628 = vsyncpa [#allocation8 + $0x1], 1 }
 0x12e   :  { %629 = vsyncpa [#allocation4], 1 }
 0x12f   :  { %631 = vsyncpa [#allocation4 + $0x1], 1 }
 0x130   :  { %632 = vsyncpa [#allocation5], 1 }
 0x131   :  { %634 = vsyncpa [#allocation5 + $0x1], 1 }

</bundles_post_ra>
